<compile_context>
chip_gen: v7x
topology: tpu7x:2x2x1
jax: 0.10.0
libtpu: 0.0.40
codegen_flags: <defaults>
</compile_context>

<pallas_src>
import functools
import math

import jax
import jax.numpy as jnp
from jax.experimental import pallas as pl
from jax.experimental.pallas import tpu as pltpu


_NEG = -1.0e30   # finite "-inf" sentinel: keeps max()/exp() NaN-free on padded tiles


def _round_up(n, m):
    return ((n + m - 1) // m) * m


def _cdiv(a, b):
    return (a + b - 1) // b


def _mine_partials_kernel(x_ref, y0_ref, y1_ref, w1x_ref, w1y_ref, b1_ref,
                          w2_ref, b2_ref,
                          t0_out, m_out, s_out,
                          t0_acc, m_acc, s_acc,
                          *, batch, batch_tile, steps_per_shard):
    s_idx = pl.program_id(0)          # shard axis ("parallel" -> megacore on v7x)
    k_idx = pl.program_id(1)          # step inside shard (reduction axis)

    @pl.when(k_idx == 0)
    def _():
        t0_acc[...] = jnp.zeros_like(t0_acc)
        m_acc[...] = jnp.full_like(m_acc, _NEG)
        s_acc[...] = jnp.zeros_like(s_acc)

    # --- first layer: x @ W1x computed once, reused for both branches (bf16 MXU,
    # f32 accumulate) -----------------------------------------------------------
    xh = jnp.dot(x_ref[...], w1x_ref[...], preferred_element_type=jnp.float32)
    yh0 = jnp.dot(y0_ref[...], w1y_ref[...], preferred_element_type=jnp.float32)
    yh1 = jnp.dot(y1_ref[...], w1y_ref[...], preferred_element_type=jnp.float32)
    b1 = b1_ref[...]
    h0 = jnp.maximum(xh + yh0 + b1, 0.0)          # hidden for T_func([x, y])
    h1 = jnp.maximum(xh + yh1 + b1, 0.0)          # hidden for T_func([x, y_shuffle])

    # --- second layer (hidden -> 1): VPU multiply + lane reduce -----------------
    w2 = w2_ref[...]
    b2 = b2_ref[...]
    t0 = jnp.sum(h0 * w2, axis=-1, keepdims=True) + b2     # (bt, 1)
    t1 = jnp.sum(h1 * w2, axis=-1, keepdims=True) + b2     # (bt, 1)

    # --- tail masking: rows >= true batch size are padding ----------------------
    row0 = (s_idx * steps_per_shard + k_idx) * batch_tile
    row = row0 + jax.lax.broadcasted_iota(jnp.int32, (batch_tile, 1), 0)
    valid = row < batch

    # running sum of T0 over valid rows
    t0_acc[...] = t0_acc[...] + jnp.sum(jnp.where(valid, t0, 0.0),
                                        axis=0, keepdims=True)

    # online logsumexp over T1 (padded rows -> sentinel -> no contribution)
    t1m = jnp.where(valid, t1, _NEG)
    m_old = m_acc[...]
    m_new = jnp.maximum(m_old, jnp.max(t1m, axis=0, keepdims=True))
    s_acc[...] = (s_acc[...] * jnp.exp(m_old - m_new)
                  + jnp.sum(jnp.exp(t1m - m_new), axis=0, keepdims=True))
    m_acc[...] = m_new

    # --- per-shard partials written once, at the last step of the shard ---------
    @pl.when(k_idx == pl.num_programs(1) - 1)
    def _():
        t0_out[...] = jnp.broadcast_to(t0_acc[...].reshape(1, 1, 1), (1, 1, 128))
        m_out[...] = jnp.broadcast_to(m_acc[...].reshape(1, 1, 1), (1, 1, 128))
        s_out[...] = jnp.broadcast_to(s_acc[...].reshape(1, 1, 1), (1, 1, 128))


def mine_forward(params, x_samples, y_samples, index_key, *,
                 batch_tile=512, n_shards=2):
    """Matches MINE.forward; torch.randint replaced by jax.random.randint."""
    B, x_dim = x_samples.shape
    y_dim = y_samples.shape[1]
    hidden = params["w1"].shape[1]

    # torch.randint(sample_size, (sample_size,)): sampling WITH replacement.
    random_index = jax.random.randint(index_key, (B,), 0, B)
    y_shuffle = y_samples[random_index]

    # ---- tiling ---------------------------------------------------------------
    bt = _round_up(min(batch_tile, _round_up(B, 8)), 8)
    nt = _cdiv(B, bt)
    ns = max(1, min(n_shards, nt))      # >1 only pays off on v7x (2 TensorCores)
    steps = _cdiv(nt, ns)
    b_pad = ns * steps * bt

    x_pad = _round_up(x_dim, 8)         # keep contraction dims sublane-aligned
    y_pad = _round_up(y_dim, 8)
    h_pad = _round_up(hidden, 128)      # lane-dense hidden (zero-padding is exact)

    # ---- operand prep: batch pad + bf16 cast fused into one XLA pass per array -
    def prep_stream(a, lane_pad):
        a = jnp.pad(a, ((0, b_pad - B), (0, lane_pad - a.shape[1])))
        return a.astype(jnp.bfloat16)

    x_p = prep_stream(x_samples, x_pad)
    y_p = prep_stream(y_samples, y_pad)
    ys_p = prep_stream(y_shuffle, y_pad)

    w1 = params["w1"]
    w1x = jnp.pad(w1[:x_dim], ((0, x_pad - x_dim), (0, h_pad - hidden))).astype(jnp.bfloat16)
    w1y = jnp.pad(w1[x_dim:], ((0, y_pad - y_dim), (0, h_pad - hidden))).astype(jnp.bfloat16)
    b1 = jnp.pad(params["b1"], ((0, 0), (0, h_pad - hidden)))
    w2 = jnp.pad(params["w2"], ((0, 0), (0, h_pad - hidden)))
    b2 = params["b2"]

    # ---- VMEM budget (v7x: 32 MiB scoped default / 64 MiB physical) ------------
    stream_bytes = 2 * bt * (x_pad + 2 * y_pad) * 2          # double-buffered bf16 tiles
    hidden_bytes = 5 * bt * h_pad * 4                        # xh/yh0/yh1/h0/h1 f32 temps
    weight_bytes = (x_pad + y_pad) * h_pad * 2 + 2 * h_pad * 4 + 4
    vmem_est = stream_bytes + hidden_bytes + weight_bytes
    cp_kwargs = dict(dimension_semantics=("parallel", "arbitrary"))
    if vmem_est > 24 * 1024 * 1024:
        cp_kwargs["vmem_limit_bytes"] = min(vmem_est + (8 << 20), 60 << 20)

    kernel = functools.partial(_mine_partials_kernel,
                               batch=B, batch_tile=bt, steps_per_shard=steps)

    row_map = lambda s, k: (s * steps + k, 0)       # streamed per-tile operands
    pinned = lambda s, k: (0, 0)                    # grid-invariant weights
    part_map = lambda s, k: (s, 0, 0)               # per-shard partial outputs

    t0_p, m_p, s_p = pl.pallas_call(
        kernel,
        out_shape=(
            jax.ShapeDtypeStruct((ns, 1, 128), jnp.float32),
            jax.ShapeDtypeStruct((ns, 1, 128), jnp.float32),
            jax.ShapeDtypeStruct((ns, 1, 128), jnp.float32),
        ),
        grid_spec=pltpu.PrefetchScalarGridSpec(
            num_scalar_prefetch=0,
            grid=(ns, steps),
            in_specs=[
                # Streamed inputs. Add pipeline_mode=pl.Buffered(3) here only if
                # a profile shows exposed DMA (review item 6); the default double
                # buffer already hides HBM latency at these tile sizes.
                pl.BlockSpec((bt, x_pad), row_map),
                pl.BlockSpec((bt, y_pad), row_map),
                pl.BlockSpec((bt, y_pad), row_map),
                pl.BlockSpec((x_pad, h_pad), pinned),
                pl.BlockSpec((y_pad, h_pad), pinned),
                pl.BlockSpec((1, h_pad), pinned),
                pl.BlockSpec((1, h_pad), pinned),
                pl.BlockSpec((1, 1), pinned),
            ],
            out_specs=[
                pl.BlockSpec((1, 1, 128), part_map),
                pl.BlockSpec((1, 1, 128), part_map),
                pl.BlockSpec((1, 1, 128), part_map),
            ],
            scratch_shapes=[pltpu.VMEM((1, 1), jnp.float32)] * 3,
        ),
        compiler_params=pltpu.CompilerParams(**cp_kwargs),
    )(x_p, y_p, ys_p, w1x, w1y, b1, w2, b2)

    # ---- combine per-shard partials (3 scalars per shard) ----------------------
    t0_sum = jnp.sum(t0_p[:, 0, 0])
    m = m_p[:, 0, 0]
    s = s_p[:, 0, 0]
    m_g = jnp.max(m)
    s_g = jnp.sum(s * jnp.exp(m - m_g))      # padded shards: m=-1e30 -> exp -> 0
    lse = m_g + jnp.log(s_g) - math.log(B)
    return t0_sum / B - lse


def init_params(key, x_dim, y_dim, hidden_size):
    """PyTorch nn.Linear default init; weights stored transposed: (in, out)."""
    ks = jax.random.split(key, 4)
    fan1 = x_dim + y_dim
    bound1 = 1.0 / math.sqrt(fan1)
    w1 = jax.random.uniform(ks[0], (fan1, hidden_size), jnp.float32, -bound1, bound1)
    b1 = jax.random.uniform(ks[1], (1, hidden_size), jnp.float32, -bound1, bound1)
    bound2 = 1.0 / math.sqrt(hidden_size)
    w2 = jax.random.uniform(ks[2], (1, hidden_size), jnp.float32, -bound2, bound2)
    b2 = jax.random.uniform(ks[3], (1, 1), jnp.float32, -bound2, bound2)
    return dict(w1=w1, b1=b1, w2=w2, b2=b2)


def _reference(params, x, y, index_key):
    """Pure-JAX f32 reference (same index key -> same shuffle indices)."""
    b = x.shape[0]
    idx = jax.random.randint(index_key, (b,), 0, b)

    def t_func(zz):
        h = jnp.maximum(zz @ params["w1"] + params["b1"], 0.0)
        return h @ params["w2"].T + params["b2"]

    t0 = t_func(jnp.concatenate([x, y], axis=-1))               # (B, 1)
    t1 = t_func(jnp.concatenate([x, y[idx]], axis=-1))[:, 0]    # (B,)
    m = jnp.max(t1)
    lse = m + jnp.log(jnp.sum(jnp.exp(t1 - m))) - jnp.log(float(b))
    return t0.mean() - lse


if __name__ == "__main__":
    key = jax.random.PRNGKey(0)
    k_param, k_x, k_y, k_idx = jax.random.split(key, 4)

    # Small config that still exercises everything: B is not a multiple of the
    # tile, so the grid is 2 shards x 3 steps with a partially-padded and a
    # fully-padded tail tile.
    B, X_DIM, Y_DIM, HIDDEN = 300, 32, 16, 32
    BATCH_TILE = 64

    params = init_params(k_param, X_DIM, Y_DIM, HIDDEN)
    x_samples = jax.random.normal(k_x, (B, X_DIM), jnp.float32)
    y_samples = jax.random.normal(k_y, (B, Y_DIM), jnp.float32)

    lower_bound = mine_forward(params, x_samples, y_samples, k_idx,
                               batch_tile=BATCH_TILE, n_shards=2)
    jax.block_until_ready(lower_bound)

    expected = _reference(params, x_samples, y_samples, k_idx)

    # bf16 streamed operands vs. f32 reference -> relaxed tolerance (review note).
    assert bool(jnp.isfinite(lower_bound)), lower_bound
    assert abs(float(lower_bound) - float(expected)) < 2e-2, (float(lower_bound),
                                                              float(expected))
    print("KERNEL_OK")
</pallas_src>

<mosaic_0001>
module attributes {stable_mosaic.version = 11 : i64} {
  func.func @_mine_partials_kernel(%arg0: i32, %arg1: i32, %arg2: memref<64x32xbf16, #tpu.memory_space<vmem>>, %arg3: memref<64x16xbf16, #tpu.memory_space<vmem>>, %arg4: memref<64x16xbf16, #tpu.memory_space<vmem>>, %arg5: memref<32x128xbf16, #tpu.memory_space<vmem>>, %arg6: memref<16x128xbf16, #tpu.memory_space<vmem>>, %arg7: memref<1x128xf32, #tpu.memory_space<vmem>>, %arg8: memref<1x128xf32, #tpu.memory_space<vmem>>, %arg9: memref<1x1xf32, #tpu.memory_space<vmem>>, %arg10: memref<1x1x128xf32, #tpu.memory_space<vmem>>, %arg11: memref<1x1x128xf32, #tpu.memory_space<vmem>>, %arg12: memref<1x1x128xf32, #tpu.memory_space<vmem>>, %arg13: memref<1x1xf32, #tpu.memory_space<vmem>>, %arg14: memref<1x1xf32, #tpu.memory_space<vmem>>, %arg15: memref<1x1xf32, #tpu.memory_space<vmem>>) attributes {dimension_semantics = [#tpu.dimension_semantics<parallel>, #tpu.dimension_semantics<arbitrary>], iteration_bounds = array<i64: 2, 3>, scalar_prefetch = 0 : i64, scratch_operands = 3 : i64, tpu.core_type = #tpu.core_type<tc>, window_params = [{transform_indices = @transform_0, window_bounds = array<i64: 64, 32>}, {transform_indices = @transform_1, window_bounds = array<i64: 64, 16>}, {transform_indices = @transform_2, window_bounds = array<i64: 64, 16>}, {pipeline_mode = #tpu.pipeline_mode<synchronous>, transform_indices = @transform_3, window_bounds = array<i64: 32, 128>}, {pipeline_mode = #tpu.pipeline_mode<synchronous>, transform_indices = @transform_4, window_bounds = array<i64: 16, 128>}, {pipeline_mode = #tpu.pipeline_mode<synchronous>, transform_indices = @transform_5, window_bounds = array<i64: 1, 128>}, {pipeline_mode = #tpu.pipeline_mode<synchronous>, transform_indices = @transform_6, window_bounds = array<i64: 1, 128>}, {pipeline_mode = #tpu.pipeline_mode<synchronous>, transform_indices = @transform_7, window_bounds = array<i64: 1, 1>}, {transform_indices = @transform_8, window_bounds = array<i64: 1, 1, 128>}, {transform_indices = @transform_9, window_bounds = array<i64: 1, 1, 128>}, {transform_indices = @transform_10, window_bounds = array<i64: 1, 1, 128>}]} {
    %c0_i32 = arith.constant 0 : i32
    %0 = arith.cmpi eq, %arg1, %c0_i32 : i32
    %1 = arith.extui %0 : i1 to i32
    %c0_i32_0 = arith.constant 0 : i32
    %2 = arith.cmpi ne, %1, %c0_i32_0 : i32
    scf.if %2 {
      %cst_42 = arith.constant 0.000000e+00 : f32
      %73 = vector.broadcast %cst_42 : f32 to vector<1x1xf32>
      %c0_43 = arith.constant 0 : index
      %c0_44 = arith.constant 0 : index
      %74 = vector.load %arg13[%c0_43, %c0_44] : memref<1x1xf32, #tpu.memory_space<vmem>>, vector<1x1xf32>
      tpu.vector_store %arg13[%c0_43, %c0_44], %73 {strides = array<i32>} : memref<1x1xf32, #tpu.memory_space<vmem>>, vector<1x1xf32>,
      %cst_45 = arith.constant -1.000000e+30 : f32
      %75 = vector.broadcast %cst_45 : f32 to vector<1x1xf32>
      %c0_46 = arith.constant 0 : index
      %c0_47 = arith.constant 0 : index
      %76 = vector.load %arg14[%c0_46, %c0_47] : memref<1x1xf32, #tpu.memory_space<vmem>>, vector<1x1xf32>
      tpu.vector_store %arg14[%c0_46, %c0_47], %75 {strides = array<i32>} : memref<1x1xf32, #tpu.memory_space<vmem>>, vector<1x1xf32>,
      %cst_48 = arith.constant 0.000000e+00 : f32
      %77 = vector.broadcast %cst_48 : f32 to vector<1x1xf32>
      %c0_49 = arith.constant 0 : index
      %c0_50 = arith.constant 0 : index
      %78 = vector.load %arg15[%c0_49, %c0_50] : memref<1x1xf32, #tpu.memory_space<vmem>>, vector<1x1xf32>
      tpu.vector_store %arg15[%c0_49, %c0_50], %77 {strides = array<i32>} : memref<1x1xf32, #tpu.memory_space<vmem>>, vector<1x1xf32>,
    } else {
    }
    %c0 = arith.constant 0 : index
    %c0_1 = arith.constant 0 : index
    %3 = vector.load %arg2[%c0, %c0_1] : memref<64x32xbf16, #tpu.memory_space<vmem>>, vector<64x32xbf16>
    %c0_2 = arith.constant 0 : index
    %c0_3 = arith.constant 0 : index
    %4 = vector.load %arg5[%c0_2, %c0_3] : memref<32x128xbf16, #tpu.memory_space<vmem>>, vector<32x128xbf16>
    %cst = arith.constant dense<0.000000e+00> : vector<64x128xf32>
    %5 = tpu.matmul %3, %4, %cst {dimension_numbers = #tpu.dot_dimension_numbers<[1], [0], [0], [1], [0, 0, 1, 1], [], []>} : vector<64x32xbf16>, vector<32x128xbf16>, vector<64x128xf32> -> vector<64x128xf32>
    %c0_4 = arith.constant 0 : index
    %c0_5 = arith.constant 0 : index
    %6 = vector.load %arg3[%c0_4, %c0_5] : memref<64x16xbf16, #tpu.memory_space<vmem>>, vector<64x16xbf16>
    %c0_6 = arith.constant 0 : index
    %c0_7 = arith.constant 0 : index
    %7 = vector.load %arg6[%c0_6, %c0_7] : memref<16x128xbf16, #tpu.memory_space<vmem>>, vector<16x128xbf16>
    %cst_8 = arith.constant dense<0.000000e+00> : vector<64x128xf32>
    %8 = tpu.matmul %6, %7, %cst_8 {dimension_numbers = #tpu.dot_dimension_numbers<[1], [0], [0], [1], [0, 0, 1, 1], [], []>} : vector<64x16xbf16>, vector<16x128xbf16>, vector<64x128xf32> -> vector<64x128xf32>
    %c0_9 = arith.constant 0 : index
    %c0_10 = arith.constant 0 : index
    %9 = vector.load %arg4[%c0_9, %c0_10] : memref<64x16xbf16, #tpu.memory_space<vmem>>, vector<64x16xbf16>
    %c0_11 = arith.constant 0 : index
    %c0_12 = arith.constant 0 : index
    %10 = vector.load %arg6[%c0_11, %c0_12] : memref<16x128xbf16, #tpu.memory_space<vmem>>, vector<16x128xbf16>
    %cst_13 = arith.constant dense<0.000000e+00> : vector<64x128xf32>
    %11 = tpu.matmul %9, %10, %cst_13 {dimension_numbers = #tpu.dot_dimension_numbers<[1], [0], [0], [1], [0, 0, 1, 1], [], []>} : vector<64x16xbf16>, vector<16x128xbf16>, vector<64x128xf32> -> vector<64x128xf32>
    %c0_14 = arith.constant 0 : index
    %c0_15 = arith.constant 0 : index
    %12 = vector.load %arg7[%c0_14, %c0_15] : memref<1x128xf32, #tpu.memory_space<vmem>>, vector<1x128xf32>
    %13 = arith.addf %5, %8 : vector<64x128xf32>
    %14 = vector.broadcast %12 : vector<1x128xf32> to vector<64x128xf32>
    %15 = arith.addf %13, %14 : vector<64x128xf32>
    %cst_16 = arith.constant 0.000000e+00 : f32
    %16 = vector.broadcast %cst_16 : f32 to vector<64x128xf32>
    %17 = arith.maximumf %15, %16 : vector<64x128xf32>
    %18 = arith.addf %5, %11 : vector<64x128xf32>
    %19 = vector.broadcast %12 : vector<1x128xf32> to vector<64x128xf32>
    %20 = arith.addf %18, %19 : vector<64x128xf32>
    %cst_17 = arith.constant 0.000000e+00 : f32
    %21 = vector.broadcast %cst_17 : f32 to vector<64x128xf32>
    %22 = arith.maximumf %20, %21 : vector<64x128xf32>
    %c0_18 = arith.constant 0 : index
    %c0_19 = arith.constant 0 : index
    %23 = vector.load %arg8[%c0_18, %c0_19] : memref<1x128xf32, #tpu.memory_space<vmem>>, vector<1x128xf32>
    %c0_20 = arith.constant 0 : index
    %c0_21 = arith.constant 0 : index
    %24 = vector.load %arg9[%c0_20, %c0_21] : memref<1x1xf32, #tpu.memory_space<vmem>>, vector<1x1xf32>
    %25 = vector.broadcast %23 : vector<1x128xf32> to vector<64x128xf32>
    %26 = arith.mulf %17, %25 : vector<64x128xf32>
    %cst_22 = arith.constant dense<0.000000e+00> : vector<64xf32>
    %27 = vector.multi_reduction <add>, %26, %cst_22 [1] : vector<64x128xf32> to vector<64xf32>
    %28 = vector.shape_cast %27 : vector<64xf32> to vector<64x1xf32>
    %29 = vector.broadcast %24 : vector<1x1xf32> to vector<64x1xf32>
    %30 = arith.addf %28, %29 : vector<64x1xf32>
    %31 = vector.broadcast %23 : vector<1x128xf32> to vector<64x128xf32>
    %32 = arith.mulf %22, %31 : vector<64x128xf32>
    %cst_23 = arith.constant dense<0.000000e+00> : vector<64xf32>
    %33 = vector.multi_reduction <add>, %32, %cst_23 [1] : vector<64x128xf32> to vector<64xf32>
    %34 = vector.shape_cast %33 : vector<64xf32> to vector<64x1xf32>
    %35 = vector.broadcast %24 : vector<1x1xf32> to vector<64x1xf32>
    %36 = arith.addf %34, %35 : vector<64x1xf32>
    %c3_i32 = arith.constant 3 : i32
    %37 = arith.muli %arg0, %c3_i32 : i32
    %38 = arith.addi %37, %arg1 : i32
    %c64_i32 = arith.constant 64 : i32
    %39 = arith.muli %38, %c64_i32 : i32
    %40 = tpu.iota {dimensions = array<i32: 0>} : vector<64x1xi32>
    %41 = vector.broadcast %39 : i32 to vector<64x1xi32>
    %42 = arith.addi %41, %40 : vector<64x1xi32>
    %c300_i32 = arith.constant 300 : i32
    %43 = vector.broadcast %c300_i32 : i32 to vector<64x1xi32>
    %44 = arith.cmpi slt, %42, %43 : vector<64x1xi32>
    %c0_24 = arith.constant 0 : index
    %c0_25 = arith.constant 0 : index
    %45 = vector.load %arg13[%c0_24, %c0_25] : memref<1x1xf32, #tpu.memory_space<vmem>>, vector<1x1xf32>
    %cst_26 = arith.constant 0.000000e+00 : f32
    %46 = vector.broadcast %cst_26 : f32 to vector<64x1xf32>
    %47 = arith.select %44, %30, %46 : vector<64x1xi1>, vector<64x1xf32>
    %cst_27 = arith.constant dense<0.000000e+00> : vector<1xf32>
    %48 = vector.multi_reduction <add>, %47, %cst_27 [0] : vector<64x1xf32> to vector<1xf32>
    %49 = vector.shape_cast %48 : vector<1xf32> to vector<1x1xf32>
    %50 = arith.addf %45, %49 : vector<1x1xf32>
    %c0_28 = arith.constant 0 : index
    %c0_29 = arith.constant 0 : index
    %51 = vector.load %arg13[%c0_28, %c0_29] : memref<1x1xf32, #tpu.memory_space<vmem>>, vector<1x1xf32>
    tpu.vector_store %arg13[%c0_28, %c0_29], %50 {strides = array<i32>} : memref<1x1xf32, #tpu.memory_space<vmem>>, vector<1x1xf32>,
    %cst_30 = arith.constant -1.000000e+30 : f32
    %52 = vector.broadcast %cst_30 : f32 to vector<64x1xf32>
    %53 = arith.select %44, %36, %52 : vector<64x1xi1>, vector<64x1xf32>
    %c0_31 = arith.constant 0 : index
    %c0_32 = arith.constant 0 : index
    %54 = vector.load %arg14[%c0_31, %c0_32] : memref<1x1xf32, #tpu.memory_space<vmem>>, vector<1x1xf32>
    %cst_33 = arith.constant dense<0xFF800000> : vector<1xf32>
    %55 = vector.multi_reduction <maximumf>, %53, %cst_33 [0] : vector<64x1xf32> to vector<1xf32>
    %56 = vector.shape_cast %55 : vector<1xf32> to vector<1x1xf32>
    %57 = arith.maximumf %54, %56 : vector<1x1xf32>
    %c0_34 = arith.constant 0 : index
    %c0_35 = arith.constant 0 : index
    %58 = vector.load %arg15[%c0_34, %c0_35] : memref<1x1xf32, #tpu.memory_space<vmem>>, vector<1x1xf32>
    %59 = arith.subf %54, %57 : vector<1x1xf32>
    %60 = math.exp %59 : vector<1x1xf32>
    %61 = arith.mulf %58, %60 : vector<1x1xf32>
    %62 = vector.broadcast %57 : vector<1x1xf32> to vector<64x1xf32>
    %63 = arith.subf %53, %62 : vector<64x1xf32>
    %64 = math.exp %63 : vector<64x1xf32>
    %cst_36 = arith.constant dense<0.000000e+00> : vector<1xf32>
    %65 = vector.multi_reduction <add>, %64, %cst_36 [0] : vector<64x1xf32> to vector<1xf32>
    %66 = vector.shape_cast %65 : vector<1xf32> to vector<1x1xf32>
    %67 = arith.addf %61, %66 : vector<1x1xf32>
    %c0_37 = arith.constant 0 : index
    %c0_38 = arith.constant 0 : index
    %68 = vector.load %arg15[%c0_37, %c0_38] : memref<1x1xf32, #tpu.memory_space<vmem>>, vector<1x1xf32>
    tpu.vector_store %arg15[%c0_37, %c0_38], %67 {strides = array<i32>} : memref<1x1xf32, #tpu.memory_space<vmem>>, vector<1x1xf32>,
    %c0_39 = arith.constant 0 : index
    %c0_40 = arith.constant 0 : index
    %69 = vector.load %arg14[%c0_39, %c0_40] : memref<1x1xf32, #tpu.memory_space<vmem>>, vector<1x1xf32>
    tpu.vector_store %arg14[%c0_39, %c0_40], %57 {strides = array<i32>} : memref<1x1xf32, #tpu.memory_space<vmem>>, vector<1x1xf32>,
    %c2_i32 = arith.constant 2 : i32
    %70 = arith.cmpi eq, %arg1, %c2_i32 : i32
    %71 = arith.extui %70 : i1 to i32
    %c0_i32_41 = arith.constant 0 : i32
    %72 = arith.cmpi ne, %71, %c0_i32_41 : i32
    scf.if %72 {
      %c0_42 = arith.constant 0 : index
      %c0_43 = arith.constant 0 : index
      %73 = vector.load %arg13[%c0_42, %c0_43] : memref<1x1xf32, #tpu.memory_space<vmem>>, vector<1x1xf32>
      %74 = vector.shape_cast %73 : vector<1x1xf32> to vector<1x1x1xf32>
      %75 = vector.shape_cast %74 : vector<1x1x1xf32> to vector<1x1x1xf32>
      %76 = vector.broadcast %75 : vector<1x1x1xf32> to vector<1x1x128xf32>
      %c0_44 = arith.constant 0 : index
      %c0_45 = arith.constant 0 : index
      %c0_46 = arith.constant 0 : index
      %77 = vector.load %arg10[%c0_44, %c0_45, %c0_46] : memref<1x1x128xf32, #tpu.memory_space<vmem>>, vector<1x1x128xf32>
      tpu.vector_store %arg10[%c0_44, %c0_45, %c0_46], %76 {strides = array<i32>} : memref<1x1x128xf32, #tpu.memory_space<vmem>>, vector<1x1x128xf32>,
      %c0_47 = arith.constant 0 : index
      %c0_48 = arith.constant 0 : index
      %78 = vector.load %arg14[%c0_47, %c0_48] : memref<1x1xf32, #tpu.memory_space<vmem>>, vector<1x1xf32>
      %79 = vector.shape_cast %78 : vector<1x1xf32> to vector<1x1x1xf32>
      %80 = vector.shape_cast %79 : vector<1x1x1xf32> to vector<1x1x1xf32>
      %81 = vector.broadcast %80 : vector<1x1x1xf32> to vector<1x1x128xf32>
      %c0_49 = arith.constant 0 : index
      %c0_50 = arith.constant 0 : index
      %c0_51 = arith.constant 0 : index
      %82 = vector.load %arg11[%c0_49, %c0_50, %c0_51] : memref<1x1x128xf32, #tpu.memory_space<vmem>>, vector<1x1x128xf32>
      tpu.vector_store %arg11[%c0_49, %c0_50, %c0_51], %81 {strides = array<i32>} : memref<1x1x128xf32, #tpu.memory_space<vmem>>, vector<1x1x128xf32>,
      %c0_52 = arith.constant 0 : index
      %c0_53 = arith.constant 0 : index
      %83 = vector.load %arg15[%c0_52, %c0_53] : memref<1x1xf32, #tpu.memory_space<vmem>>, vector<1x1xf32>
      %84 = vector.shape_cast %83 : vector<1x1xf32> to vector<1x1x1xf32>
      %85 = vector.shape_cast %84 : vector<1x1x1xf32> to vector<1x1x1xf32>
      %86 = vector.broadcast %85 : vector<1x1x1xf32> to vector<1x1x128xf32>
      %c0_54 = arith.constant 0 : index
      %c0_55 = arith.constant 0 : index
      %c0_56 = arith.constant 0 : index
      %87 = vector.load %arg12[%c0_54, %c0_55, %c0_56] : memref<1x1x128xf32, #tpu.memory_space<vmem>>, vector<1x1x128xf32>
      tpu.vector_store %arg12[%c0_54, %c0_55, %c0_56], %86 {strides = array<i32>} : memref<1x1x128xf32, #tpu.memory_space<vmem>>, vector<1x1x128xf32>,
    } else {
    }
    return
  }
  func.func @transform_0(%arg0: i32, %arg1: i32) -> (i32, i32) {
    %c3_i32 = arith.constant 3 : i32
    %0 = arith.muli %arg0, %c3_i32 : i32
    %1 = arith.addi %0, %arg1 : i32
    %c0_i32 = arith.constant 0 : i32
    %c0_i32_0 = arith.constant 0 : i32
    return %1, %c0_i32 : i32, i32
  }
  func.func @transform_1(%arg0: i32, %arg1: i32) -> (i32, i32) {
    %c3_i32 = arith.constant 3 : i32
    %0 = arith.muli %arg0, %c3_i32 : i32
    %1 = arith.addi %0, %arg1 : i32
    %c0_i32 = arith.constant 0 : i32
    %c0_i32_0 = arith.constant 0 : i32
    return %1, %c0_i32 : i32, i32
  }
  func.func @transform_2(%arg0: i32, %arg1: i32) -> (i32, i32) {
    %c3_i32 = arith.constant 3 : i32
    %0 = arith.muli %arg0, %c3_i32 : i32
    %1 = arith.addi %0, %arg1 : i32
    %c0_i32 = arith.constant 0 : i32
    %c0_i32_0 = arith.constant 0 : i32
    return %1, %c0_i32 : i32, i32
  }
  func.func @transform_3(%arg0: i32, %arg1: i32) -> (i32, i32) {
    %c0_i32 = arith.constant 0 : i32
    %c0_i32_0 = arith.constant 0 : i32
    %c0_i32_1 = arith.constant 0 : i32
    return %c0_i32, %c0_i32_0 : i32, i32
  }
  func.func @transform_4(%arg0: i32, %arg1: i32) -> (i32, i32) {
    %c0_i32 = arith.constant 0 : i32
    %c0_i32_0 = arith.constant 0 : i32
    %c0_i32_1 = arith.constant 0 : i32
    return %c0_i32, %c0_i32_0 : i32, i32
  }
  func.func @transform_5(%arg0: i32, %arg1: i32) -> (i32, i32) {
    %c0_i32 = arith.constant 0 : i32
    %c0_i32_0 = arith.constant 0 : i32
    %c0_i32_1 = arith.constant 0 : i32
    return %c0_i32, %c0_i32_0 : i32, i32
  }
  func.func @transform_6(%arg0: i32, %arg1: i32) -> (i32, i32) {
    %c0_i32 = arith.constant 0 : i32
    %c0_i32_0 = arith.constant 0 : i32
    %c0_i32_1 = arith.constant 0 : i32
    return %c0_i32, %c0_i32_0 : i32, i32
  }
  func.func @transform_7(%arg0: i32, %arg1: i32) -> (i32, i32) {
    %c0_i32 = arith.constant 0 : i32
    %c0_i32_0 = arith.constant 0 : i32
    %c0_i32_1 = arith.constant 0 : i32
    return %c0_i32, %c0_i32_0 : i32, i32
  }
  func.func @transform_8(%arg0: i32, %arg1: i32) -> (i32, i32, i32) {
    %c0_i32 = arith.constant 0 : i32
    %c0_i32_0 = arith.constant 0 : i32
    %c0_i32_1 = arith.constant 0 : i32
    return %arg0, %c0_i32, %c0_i32_0 : i32, i32, i32
  }
  func.func @transform_9(%arg0: i32, %arg1: i32) -> (i32, i32, i32) {
    %c0_i32 = arith.constant 0 : i32
    %c0_i32_0 = arith.constant 0 : i32
    %c0_i32_1 = arith.constant 0 : i32
    return %arg0, %c0_i32, %c0_i32_0 : i32, i32, i32
  }
  func.func @transform_10(%arg0: i32, %arg1: i32) -> (i32, i32, i32) {
    %c0_i32 = arith.constant 0 : i32
    %c0_i32_0 = arith.constant 0 : i32
    %c0_i32_1 = arith.constant 0 : i32
    return %arg0, %c0_i32, %c0_i32_0 : i32, i32, i32
  }
}

</mosaic_0001>

<bundles_post_ra>
// kernel: tpu_custom_call.1
= control target key start
LH: loop header
LB: loop body
LE: loop exit
PB: predicated region body
PF: predicated region fallthrough
CT: control target
= control target key end

     0   :  { %s2233_s0 = inlined_call_operand.vmem [shape: bf16[384,32], index: 0, kind: input, shape index: {}]   ;;  %s2234_s1 = inlined_call_operand.vmem [shape: bf16[384,16], index: 1, kind: input, shape index: {}]   ;;  %s2235_s2 = inlined_call_operand.vmem [shape: bf16[384,16], index: 2, kind: input, shape index: {}]   ;;  %s2236_s3 = inlined_call_operand.vmem [shape: bf16[32,128], index: 3, kind: input, shape index: {}]   ;;  %s2237_s4 = inlined_call_operand.vmem [shape: bf16[16,128], index: 4, kind: input, shape index: {}]   ;;  %s2238_s5 = inlined_call_operand.vmem [shape: f32[1,128], index: 5, kind: input, shape index: {}]   ;;  %s2239_s6 = inlined_call_operand.vmem [shape: f32[1,128], index: 6, kind: input, shape index: {}]   ;;  %s2240_s7 = inlined_call_operand.<no memory space> [shape: f32[1,1], index: 7, kind: input, shape index: {}]   ;;  %s2241_s8 = inlined_call_operand.hbm [shape: f32[2,1,128], index: 8, kind: output, shape index: {0}]   ;;  %s2242_s9 = inlined_call_operand.hbm [shape: f32[2,1,128], index: 9, kind: output, shape index: {1}]   ;;  %s2243_s10 = inlined_call_operand.hbm [shape: f32[2,1,128], index: 10, kind: output, shape index: {2}]  }
   0x1   :  { %v16_v0 = vstv %s2240_s7 }
   0x2   :  { %17 = vst [vmem:[#allocation5] sm:$0x1] %v16_v0 }
   0x3   :  { %18 = vsyncpa [#allocation7], 0 }
   0x4   :  { %20 = vsyncpa [#allocation7 + $0x1], 0 }
   0x5   :  { %21 = vsyncpa [#allocation9], 0 }
   0x6   :  { %23 = vsyncpa [#allocation9 + $0x1], 0  ;;  %s1776_s15 = smov 0   ;;  %s1778_s16 = smov 0  }
   0x7   :  { %s1780_s17 = smov 0   ;;  %s1782_s18 = smov 0  }
   0x8   :  { %s1784_s19 = smov 0   ;;  %s1786_s20 = smov 0  }
   0x9   :  { %s1788_s21 = smov 0   ;;  %s1790_s7 = smov 0  }
   0xa LB: > { %2252 = sst [smem:[#allocation13_spill]] %s1686_s16  ;;  %s2245_s22 = sadd.s32 4294967295, %s1710_s7   ;;  %s1710_s7 = sphi %s1790_s7, %s29_s7   ;;  %s1706_s21 = sphi %s1788_s21, %s2271_s21   ;;  %s1702_s20 = sphi %s1786_s20, %s2270_s20   ;;  %s1698_s19 = sphi %s1784_s19, %s2269_s19   ;;  %s1694_s18 = sphi %s1782_s18, %s2268_s18   ;;  %s1690_s17 = sphi %s1780_s17, %s2267_s17   ;;  %s1686_s16 = sphi %s1778_s16, %s2266_s16   ;;  %s1682_s15 = sphi %s1776_s15, %s2265_s15  }
   0xb   : > { %2253 = sst [smem:[#allocation14_spill]] %s1690_s17  ;;  %s2244_s23 = sadd.s32 4294967294, %s1710_s7  }
   0xc   : > { %2254 = sst [smem:[#allocation15_spill]] %s1702_s20  ;;  %s38_s24 = sadd.s32 1, %s1702_s20 }
   0xd   : > { %2255 = sst [smem:[#allocation16_spill]] %s1706_s21  ;;  %p39_p0 = scmp.ge.s32.totalorder %s38_s24, 3 }
   0xe   : > { %s41_s25 = sadd.s32 1, %s1706_s21  ;;  %p253_p1 = scmp.ne.s32.totalorder %s1690_s17, %s1686_s16 }
   0xf   : > { %p254_p2 = scmp.eq.s32.totalorder %s2245_s22, 5  ;;  %s2273_s24 = smov (%p39_p0, %s38_s24), 0 }
  0x10   : > { %2256 = sst [smem:[#allocation17_spill]] %s2273_s24  ;;  %s2275_s25 = smov (!%p39_p0, %s41_s25), %s1706_s21 }
  0x11   : > { %p1827_p3 = por %p254_p2, %p253_p1  ;;  %p259_p4 = scmp.ne.s32.totalorder %s1686_s16, %s1682_s15 }
  0x12   : > { %p43_p5 = scmp.ge.s32.totalorder %s2275_s25, 2  ;;  %p260_p6 = scmp.eq.s32.totalorder %s2244_s23, 5 }
  0x13   : > { %p1342_p7 = scmp.ge.s32.totalorder %s1710_s7, 1  ;;  %p384_p8 = scmp.lt.s32.totalorder %s1710_s7, 7 }
  0x14   : > { %s2277_s25 = smov (%p43_p5, %s2275_s25), 0  ;;  %p1839_p9 = por %p260_p6, %p259_p4 }
  0x15   : > { %2258 = sst [smem:[#allocation18_spill]] %s2277_s25  ;;  %p385_p10 = pnand %p1342_p7, %p384_p8 }
  0x16   : > { %s2259_s27 = scalar_select %p1839_p9, 1, 0 }
  0x17   : > { %s240_s28 = ssub.s32 %s1706_s21, %s2277_s25  ;;  %s243_s29 = sadd.s32 1, %s1690_s17 }
  0x18   : > { %2260 = sst [smem:[#allocation19_spill]] %s2259_s27  ;;  %p241_p11 = scmp.eq.s32.totalorder %s240_s28, 0 }
  0x19   : > { %388 = sbr.rel (%p385_p10) target bundleno = 712 (0x2c8), region = 52  ;;  %s1850_s11 = sand.u32 (!%p385_p10), 1, %s1686_s16  }
  0x1a   : > { %s1847_s30 = scalar_select %p241_p11, %s1690_s17, %s243_s29  }
  0x1b   : > { %s445_s12 = smul.u32 (!%p385_p10), 3, %s1698_s19  ;;  %s432_s17 = scalar_lea.vmem (!%p385_p10), [#allocation6], %s1850_s11 }
  0x1c   : > { %2261 = sst [smem:[#allocation20_spill]] %s1847_s30  ;;  %s438_s16 = scalar_lea.vmem (!%p385_p10), [#allocation8], %s1850_s11 }
  0x1d   : > { %s1854_s13 = sadd.s32 (!%p385_p10), %s1694_s18, %s445_s12  ;;  %s444_s27 = scalar_lea.vmem (!%p385_p10), [#allocation10], %s1850_s11 }
  0x1e   : > { %s1343_s14 = sshll.u32 (!%p385_p10), %s1854_s13, 3  ;;  %p1349_p13 = scmp.ne.s32.totalorder (!%p385_p10), %s1694_s18, 0 }
  0x1f   : > { %p448_p12 = scmp.lt.s32.totalorder (!%p385_p10), %s1343_s14, 47 }
  0x20   : > { %479 = sbr.rel (%p1349_p13) target bundleno = 39 (0x27), region = 56  ;;  %vm480_vm0 = vcmask (!%p1349_p13), 0   ;;  %v1712_v1 = vmov (!%p1349_p13), 0.0   ;;  %v1713_v2 = vmov (!%p1349_p13), -1e+30  }
  0x21   : > { %s2279_s14 = smov (!%p448_p12, %s1343_s14), 47  ;;  %481 = vst.msk [vmem:[#allocation2] sm:$0x1] (!%p1349_p13), %vm480_vm0, %v1712_v1  ;;  %483 = vst.msk [vmem:[#allocation4] sm:$0x1] (!%p1349_p13), %vm480_vm0, %v1712_v1 }
  0x22   : > { %s1344_s23 = sshll.u32 %s2279_s14, 2  ;;  %482 = vst.msk [vmem:[#allocation3] sm:$0x1] (!%p1349_p13), %vm480_vm0, %v1713_v2 }
  0x23   : > { %s1860_s22 = scalar_lea.vmem %s2233_s0, %s1344_s23  ;;  %s1865_s21 = scalar_lea.vmem %s2234_s1, %s1344_s23 }
  0x24   : > { %s1870_s12 = scalar_lea.vmem %s2235_s2, %s1344_s23 }
  0x27 PF: > { %v1521_v3 = vld [vmem:[%s2236_s3] sm:$0xff]   ;;  %vm642_vm1 = vcmask 130048   ;;  %v1523_v5 = vld [vmem:[%s1865_s21 + $0x10] sm:$0xff]   ;;  %v1524_v6 = vld [vmem:[%s2236_s3 + $0x8] sm:$0xff]   ;;  %vm528_vm2 = vcmask 261120   ;;  %vm996_vm10 = vcmask 7168  }
  0x28   : > { %v1522_v4 = vld [vmem:[%s2237_s4] sm:$0xff]   ;;  %1403 = vmatprep.subr.bf16.mxu0 %v1521_v3  ;;  %1421 = vmatprep.mubr.msk.bf16.mxu1 %vm642_vm1, %v1523_v5  ;;  %v1525_v7 = vld [vmem:[%s1865_s21 + $0x18] sm:$0xff]   ;;  %v1527_v9 = vld [vmem:[%s1860_s22 + $0x8] sm:$0xff]   ;;  %vm1019_vm12 = vcmask 0   ;;  %p1381_p0 = scmp.ne.s32.totalorder %s1694_s18, 2 }
  0x29   : > { %1435 = vmatprep.subr.bf16.mxu1 %v1522_v4  ;;  %1404 = vmatpush3.bf16.msra.mxu0 %v1521_v3  ;;  %v1526_v8 = vld [vmem:[%s1860_s22] sm:$0xff]   ;;  %v1530_v11 = vld [vmem:[%s1860_s22 + $0x10] sm:$0xff]   ;;  %v1529_v12 = vld [vmem:[%s1870_s12 + $0x8] sm:$0xff]  }
  0x2a   : > { %1436 = vmatpush3.bf16.msra.mxu1 %v1522_v4  ;;  %1405 = vmatprep.subr.bf16.mxu0 %v1524_v6  ;;  %v1528_v10 = vld [vmem:[%s1870_s12] sm:$0xff]   ;;  %v1532_v13 = vld [vmem:[%s1870_s12 + $0x10] sm:$0xff]   ;;  %v1531_v14 = vld [vmem:[%s1860_s22 + $0x18] sm:$0xff]  }
  0x2b   : > { %1425 = vmatprep.subr.bf16.mxu1 %v1522_v4  ;;  %1407 = vmatprep.mubr.msk.bf16.mxu0 %vm528_vm2, %v1526_v8  ;;  %v1534_v15 = vld [vmem:[%s1865_s21] sm:$0xff]   ;;  %v1533_v16 = vld [vmem:[%s1870_s12 + $0x18] sm:$0xff]   ;;  %v1535_v17 = vld [vmem:[%s1865_s21 + $0x8] sm:$0xff]   ;;  %s1380_s12 = sshll.u32 %s1854_s13, 6 }
  0x2c   : > { %v1912_v27 = vld [vmem:[%s2238_s5] ss:$0 sm:$0xff] }
  0x2d   : > { %1422 = vmatmul.mubr.msk.bf16.vlgmr.msra.gmra.mrb[0].mxu1 %vm642_vm1, %v1525_v7  ;;  %1406 = vmatpush3.bf16.msra.mxu0 %v1524_v6  ;;  %v1920_v39 = vld [vmem:[%s2239_s6] ss:$0 sm:$0xff] }
  0x2e   : > { %1426 = vmatpush3.bf16.msra.mxu1 %v1522_v4  ;;  %1427 = vmatprep.mubr.msk.bf16.mxu1 %vm642_vm1, %v1528_v10 }
  0x2f   : > { %1415 = vmatprep.subr.bf16.mxu0 %v1522_v4 }
  0x30   : > { %1408 = vmatmul.mubr.msk.bf16.vlgmr.msra.gmra.mrb[0].mxu0 %vm528_vm2, %v1527_v9 }
  0x31   : > { %1411 = vmatprep.mubr.msk.bf16.mxu0 %vm528_vm2, %v1530_v11  ;;  %1416 = vmatpush3.bf16.msra.mxu0 %v1522_v4 }
  0x35   : > { %1428 = vmatmul.mubr.msk.bf16.vlgmr.msra.gmra.mrb[4].mxu1 %vm642_vm1, %v1529_v12 }
  0x36   : > { %1431 = vmatprep.mubr.msk.bf16.mxu1 %vm642_vm1, %v1532_v13 }
  0x38   : > { %1412 = vmatmul.mubr.msk.bf16.gmra.mrb[4].mxu0 %vm528_vm2, %v1531_v14 }
  0x39   : > { %1417 = vmatprep.mubr.msk.bf16.mxu0 %vm642_vm1, %v1534_v15 }
  0x3d   : > { %1432 = vmatmul.mubr.msk.bf16.gmra.mrb[8].mxu1 %vm642_vm1, %v1533_v16 }
  0x40   : > { %1418 = vmatmul.mubr.msk.bf16.vlgmr.msra.gmra.mrb[8].mxu0 %vm642_vm1, %v1535_v17 }
 0x100   : > { %v1423_v18 = vpop.f32.mrb[0].mxu1 }
 0x101   : > { %v705_v19 = vpop.f32.mrb[1].mxu1 }
 0x102   : > { %v1424_v20 = vpop.f32.mrb[2].mxu1 }
 0x103   : > { %v708_v21 = vpop.f32.mrb[3].mxu1  ;;  %v1409_v22 = vpop.f32.mrb[0].mxu0 }
 0x104   : > { %v575_v23 = vpop.f32.mrb[1].mxu0 }
 0x105   : > { %v1410_v24 = vpop.f32.mrb[2].mxu0 }
 0x106   : > { %v578_v25 = vpop.f32.mrb[3].mxu0 }
 0x108   : > { %v1429_v26 = vpop.f32.mrb[4].mxu1 }
 0x109   : > { %v858_v28 = vadd.f32 %v1429_v26, %v1409_v22  ;;  %v794_v29 = vpop.f32.mrb[5].mxu1 }
 0x10a   : > { %v856_v30 = vadd.f32 %v794_v29, %v575_v23  ;;  %v1430_v31 = vpop.f32.mrb[6].mxu1 }
 0x10b   : > { %v859_v32 = vadd.f32 %v1430_v31, %v1410_v24  ;;  %v797_v33 = vpop.f32.mrb[7].mxu1  ;;  %v1413_v34 = vpop.f32.mrb[4].mxu0  ;;  %v866_v35 = vadd.f32 %v1912_v27, %v858_v28 }
 0x10c   : > { %v857_v36 = vadd.f32 %v797_v33, %v578_v25  ;;  %v1915_v37 = vadd.f32 %v1423_v18, %v1413_v34  ;;  %v591_v38 = vpop.f32.mrb[5].mxu0  ;;  %v864_v40 = vadd.f32 %v1912_v27, %v856_v30 }
 0x10d   : > { %v867_v41 = vadd.f32 %v1912_v27, %v859_v32  ;;  %v830_v42 = vadd.f32 %v705_v19, %v591_v38  ;;  %v1414_v43 = vpop.f32.mrb[6].mxu0  ;;  %v874_v44 = vmax.f32 %v866_v35, 0.0 }
 0x10e   : > { %v865_v45 = vadd.f32 %v1912_v27, %v857_v36  ;;  %v1925_v46 = vadd.f32 %v1424_v20, %v1414_v43  ;;  %v594_v47 = vpop.f32.mrb[7].mxu0  ;;  %v872_v48 = vmax.f32 %v864_v40, 0.0  ;;  %v846_v33 = vadd.f32 %v1912_v27, %v1915_v37 }
 0x10f   : > { %v875_v49 = vmax.f32 %v867_v41, 0.0  ;;  %v831_v50 = vadd.f32 %v708_v21, %v594_v47  ;;  %v928_v51 = vmul.f32 %v1920_v39, %v874_v44  ;;  %v844_v26 = vadd.f32 %v1912_v27, %v830_v42 }
 0x110   : > { %v873_v52 = vmax.f32 %v865_v45, 0.0  ;;  %v1433_v53 = vpop.f32.mrb[8].mxu1  ;;  %v926_v54 = vmul.f32 %v1920_v39, %v872_v48  ;;  %v847_v36 = vadd.f32 %v1912_v27, %v1925_v46  ;;  %v854_v42 = vmax.f32 %v846_v33, 0.0 }
 0x111   : > { %v862_v55 = vadd.f32 %v1433_v53, %v1413_v34  ;;  %v810_v56 = vpop.f32.mrb[9].mxu1  ;;  %938 = vadd.xlane.f32.xlu1 %v928_v51  ;;  %v929_v62 = vmul.f32 %v1920_v39, %v875_v49  ;;  %v845_v30 = vadd.f32 %v1912_v27, %v831_v50  ;;  %v852_v35 = vmax.f32 %v844_v26, 0.0 }
 0x112   : > { %v860_v57 = vadd.f32 %v810_v56, %v591_v38  ;;  %v1434_v58 = vpop.f32.mrb[10].mxu1  ;;  %934 = vadd.xlane.f32.xlu0 %v926_v54  ;;  %v927_v63 = vmul.f32 %v1920_v39, %v873_v52  ;;  %v855_v37 = vmax.f32 %v847_v36, 0.0  ;;  %v894_v44 = vmul.f32 %v1920_v39, %v854_v42 }
 0x113   : > { %v863_v59 = vadd.f32 %v1434_v58, %v1414_v43  ;;  %v813_v60 = vpop.f32.mrb[11].mxu1  ;;  %v1419_v61 = vpop.f32.mrb[8].mxu0  ;;  %v870_v0 = vadd.f32 %v1912_v27, %v862_v55  ;;  %v853_v40 = vmax.f32 %v845_v30, 0.0  ;;  %v892_v41 = vmul.f32 %v1920_v39, %v852_v35 }
 0x114   : > { %v868_v1 = vadd.f32 %v1912_v27, %v860_v57  ;;  %v861_v2 = vadd.f32 %v813_v60, %v594_v47  ;;  %v828_v3 = vadd.f32 %v1419_v61, %v1409_v22  ;;  %v689_v4 = vpop.f32.mrb[9].mxu0  ;;  %v895_v45 = vmul.f32 %v1920_v39, %v855_v37  ;;  %v1971_v61 = vld [vmem:[#allocation5] ss:$0 sm:$0xff] }
 0x115   : > { %940 = vadd.xlane.f32.xlu1 %v929_v62  ;;  %v826_v5 = vadd.f32 %v689_v4, %v575_v23  ;;  %v1420_v6 = vpop.f32.mrb[10].mxu0  ;;  %v871_v8 = vadd.f32 %v1912_v27, %v863_v59  ;;  %v878_v13 = vmax.f32 %v870_v0, 0.0  ;;  %v893_v43 = vmul.f32 %v1920_v39, %v853_v40 }
 0x116   : > { %v876_v7 = vmax.f32 %v868_v1, 0.0  ;;  %v869_v9 = vadd.f32 %v1912_v27, %v861_v2  ;;  %936 = vadd.xlane.f32.xlu0 %v927_v63  ;;  %v829_v10 = vadd.f32 %v1420_v6, %v1410_v24  ;;  %v692_v11 = vpop.f32.mrb[11].mxu0  ;;  %v842_v20 = vadd.f32 %v1912_v27, %v828_v3 }
 0x117   : > { %v827_v12 = vadd.f32 %v692_v11, %v578_v25  ;;  %v840_v15 = vadd.f32 %v1912_v27, %v826_v5  ;;  %v879_v17 = vmax.f32 %v871_v8, 0.0  ;;  %v932_v22 = vmul.f32 %v1920_v39, %v878_v13 }
 0x118   : > { %v877_v14 = vmax.f32 %v869_v9, 0.0  ;;  %v930_v16 = vmul.f32 %v1920_v39, %v876_v7  ;;  %v843_v23 = vadd.f32 %v1912_v27, %v829_v10  ;;  %v850_v28 = vmax.f32 %v842_v20, 0.0 }
 0x119   : > { %v841_v18 = vadd.f32 %v1912_v27, %v827_v12  ;;  %v848_v21 = vmax.f32 %v840_v15, 0.0  ;;  %v933_v25 = vmul.f32 %v1920_v39, %v879_v17  ;;  %v961_v27 = vlaneseq }
 0x11a   : > { %942 = vadd.xlane.f32.xlu0 %v930_v16  ;;  %v931_v19 = vmul.f32 %v1920_v39, %v877_v14  ;;  %v851_v31 = vmax.f32 %v843_v23, 0.0  ;;  %v890_v34 = vmul.f32 %v1920_v39, %v850_v28  ;;  %v970_v53 = vstv %s1380_s12 }
 0x11b   : > { %v849_v24 = vmax.f32 %v841_v18, 0.0  ;;  %v888_v29 = vmul.f32 %v1920_v39, %v848_v21  ;;  %v1957_v46 = vshrl.u32 %v961_v27, 7 }
 0x11c   : > { %944 = vadd.xlane.f32.xlu1 %v931_v19  ;;  %v891_v38 = vmul.f32 %v1920_v39, %v851_v31 }
 0x11d   : > { %v889_v32 = vmul.f32 %v1920_v39, %v849_v24  ;;  %v963_v49 = vadd.s32 8, %v1957_v46  ;;  %v966_v50 = vadd.s32 32, %v1957_v46  ;;  %v967_v51 = vadd.s32 40, %v1957_v46 }
 0x11e   : > { %946 = vadd.xlane.f32.xlu0 %v932_v22  ;;  %v964_v52 = vadd.s32 16, %v1957_v46  ;;  %v965_v54 = vadd.s32 24, %v1957_v46  ;;  %v968_v39 = vadd.s32 48, %v1957_v46  ;;  %v969_v60 = vadd.s32 56, %v1957_v46 }
 0x11f   : > { %v972_v56 = vadd.s32 %v970_v53, %v963_v49  ;;  %v1966_v57 = vadd.s32 %v970_v53, %v966_v50  ;;  %v1968_v59 = vadd.s32 %v970_v53, %v967_v51  ;;  %v971_v63 = vadd.s32 %v970_v53, %v1957_v46 }
 0x120   : > { %948 = vadd.xlane.f32.xlu1 %v933_v25  ;;  %v973_v62 = vadd.s32 %v970_v53, %v964_v52  ;;  %v1974_v0 = vadd.s32 %v970_v53, %v965_v54  ;;  %v1976_v2 = vadd.s32 %v970_v53, %v968_v39  ;;  %v1984_v8 = vadd.s32 %v970_v53, %v969_v60 }
 0x121   : > { %vm980_vm3 = vcmp.lt.s32.totalorder %v972_v56, 300  ;;  %vm983_vm4 = vcmp.lt.s32.totalorder %v1966_v57, 300  ;;  %vm984_vm5 = vcmp.lt.s32.totalorder %v1968_v59, 300  ;;  %vm979_vm7 = vcmp.lt.s32.totalorder %v971_v63, 300 }
 0x122   : > { %896 = vadd.xlane.f32.xlu0 %v888_v29  ;;  %vm981_vm6 = vcmp.lt.s32.totalorder %v973_v62, 300  ;;  %vm982_vm8 = vcmp.lt.s32.totalorder %v1974_v0, 300  ;;  %vm985_vm9 = vcmp.lt.s32.totalorder %v1976_v2, 300  ;;  %vm986_vm11 = vcmp.lt.s32.totalorder %v1984_v8, 300 }
 0x124   : > { %898 = vadd.xlane.f32.xlu1 %v889_v32 }
 0x126   : > { %900 = vadd.xlane.f32.xlu0 %v890_v34 }
 0x128   : > { %902 = vadd.xlane.f32.xlu1 %v891_v38 }
 0x12a   : > { %904 = vadd.xlane.f32.xlu0 %v892_v41 }
 0x12c   : > { %906 = vadd.xlane.f32.xlu1 %v893_v43 }
 0x12e   : > { %908 = vadd.xlane.f32.xlu0 %v894_v44 }
 0x130   : > { %910 = vadd.xlane.f32.xlu1 %v895_v45 }
 0x19e   : > { %v939_v47 = vpop.xlane.xlu1 %938 }
 0x19f   : > { %v935_v48 = vpop.xlane.xlu0 %934  ;;  %v952_v5 = vadd.f32 %v1971_v61, %v939_v47 }
 0x1a0   : > { %v950_v6 = vadd.f32 %v1971_v61, %v935_v48 }
 0x1a1   : > { %v2003_v16 = vsel %vm981_vm6, %v952_v5, -1e+30 }
 0x1a2   : > { %v941_v58 = vpop.xlane.xlu1 %940  ;;  %v2006_v17 = vsel %vm979_vm7, %v950_v6, -1e+30  ;;  %v1032_v32 = vsel %vm996_vm10, %v2003_v16, -inf }
 0x1a3   : > { %v937_v55 = vpop.xlane.xlu0 %936  ;;  %v953_v9 = vadd.f32 %v1971_v61, %v941_v58  ;;  %v1030_v28 = vsel %vm996_vm10, %v2006_v17, -inf }
 0x1a4   : > { %v951_v3 = vadd.f32 %v1971_v61, %v937_v55 }
 0x1a5   : > { %v2013_v20 = vsel %vm982_vm8, %v953_v9, -1e+30 }
 0x1a6   : > { %v1995_v13 = vsel %vm980_vm3, %v951_v3, -1e+30  ;;  %v1033_v33 = vsel %vm996_vm10, %v2013_v20, -inf }
 0x1a7   : > { %v943_v1 = vpop.xlane.xlu0 %942  ;;  %v1031_v24 = vsel %vm996_vm10, %v1995_v13, -inf }
 0x1a8   : > { %v954_v4 = vadd.f32 %v1971_v61, %v943_v1 }
 0x1a9   : > { %v945_v7 = vpop.xlane.xlu1 %944 }
 0x1aa   : > { %v955_v10 = vadd.f32 %v1971_v61, %v945_v7  ;;  %v1991_v11 = vsel %vm983_vm4, %v954_v4, -1e+30 }
 0x1ab   : > { %v947_v12 = vpop.xlane.xlu0 %946  ;;  %v1034_v21 = vsel %vm996_vm10, %v1991_v11, -inf }
 0x1ac   : > { %v1999_v14 = vsel %vm984_vm5, %v955_v10, -1e+30  ;;  %v956_v15 = vadd.f32 %v1971_v61, %v947_v12  ;;  %v1035_v34 = vmax.f32 %v1030_v28, %v1034_v21  ;;  %v1029_v28 = vld [vmem:[#allocation3] sm:$0x1] }
 0x1ad   : > { %v1036_v18 = vsel %vm996_vm10, %v1999_v14, -inf  ;;  %v949_v19 = vpop.xlane.xlu1 %948 }
 0x1ae   : > { %v2019_v22 = vsel %vm985_vm9, %v956_v15, -1e+30  ;;  %v957_v23 = vadd.f32 %v1971_v61, %v949_v19  ;;  %v1037_v29 = vmax.f32 %v1031_v24, %v1036_v18 }
 0x1af   : > { %v1038_v25 = vsel %vm996_vm10, %v2019_v22, -inf  ;;  %v897_v26 = vpop.xlane.xlu0 %896 }
 0x1b0   : > { %v2030_v30 = vsel %vm986_vm11, %v957_v23, -1e+30  ;;  %v918_v31 = vadd.f32 %v1971_v61, %v897_v26  ;;  %v1039_v38 = vmax.f32 %v1032_v32, %v1038_v25  ;;  %v1042_v37 = vmax.f32 %v1035_v34, %v1037_v29 }
 0x1b1   : > { %v1040_v35 = vsel %vm996_vm10, %v2030_v30, -inf  ;;  %v899_v36 = vpop.xlane.xlu1 %898 }
 0x1b2   : > { %v1041_v40 = vmax.f32 %v1033_v33, %v1040_v35  ;;  %v988_v41 = vsel %vm979_vm7, %v918_v31, 0.0  ;;  %v919_v42 = vadd.f32 %v1971_v61, %v899_v36  ;;  %v2068_v31 = vsub.s32 0, %v1957_v46 }
 0x1b3   : > { %v901_v43 = vpop.xlane.xlu0 %900  ;;  %v997_v47 = vsel %vm996_vm10, %v988_v41, 0.0 }
 0x1b4   : > { %v1043_v44 = vmax.f32 %v1039_v38, %v1041_v40  ;;  %v989_v45 = vsel %vm980_vm3, %v919_v42, 0.0  ;;  %v920_v27 = vadd.f32 %v1971_v61, %v901_v43 }
 0x1b5   : > { %v998_v48 = vsel %vm996_vm10, %v989_v45, 0.0  ;;  %v903_v49 = vpop.xlane.xlu1 %902 }
 0x1b6   : > { %v1044_v50 = vmax.f32 %v1042_v37, %v1043_v44  ;;  %v999_v51 = vadd.f32 %v998_v48, %v997_v47  ;;  %v990_v52 = vsel %vm981_vm6, %v920_v27, 0.0  ;;  %v921_v53 = vadd.f32 %v1971_v61, %v903_v49  ;;  %v987_v48 = vld [vmem:[#allocation2] sm:$0x1] }
 0x1b7   : > { %v1000_v54 = vsel %vm996_vm10, %v990_v52, 0.0  ;;  %v905_v55 = vpop.xlane.xlu0 %904 }
 0x1b8   : > { %v1045_v39 = vrot.slane %v1044_v50, 4  ;;  %v1001_v58 = vadd.f32 %v1000_v54, %v999_v51  ;;  %v991_v56 = vsel %vm982_vm8, %v921_v53, 0.0  ;;  %v922_v60 = vadd.f32 %v1971_v61, %v905_v55 }
 0x1b9   : > { %v1002_v63 = vsel %vm996_vm10, %v991_v56, 0.0  ;;  %v907_v1 = vpop.xlane.xlu1 %906 }
 0x1ba   : > { %v1046_v3 = vmax.f32 %v1044_v50, %v1045_v39  ;;  %v1003_v4 = vadd.f32 %v1002_v63, %v1001_v58  ;;  %v992_v62 = vsel %vm983_vm4, %v922_v60, 0.0  ;;  %v923_v5 = vadd.f32 %v1971_v61, %v907_v1 }
 0x1bb   : > { %v1004_v6 = vsel %vm996_vm10, %v992_v62, 0.0  ;;  %v909_v7 = vpop.xlane.xlu0 %908 }
 0x1bc   : > { %v1047_v9 = vrot.slane %v1046_v3, 2  ;;  %v1005_v10 = vadd.f32 %v1004_v6, %v1003_v4  ;;  %v993_v0 = vsel %vm984_vm5, %v923_v5, 0.0  ;;  %v924_v12 = vadd.f32 %v1971_v61, %v909_v7 }
 0x1bd   : > { %v1006_v15 = vsel %vm996_vm10, %v993_v0, 0.0  ;;  %v911_v18 = vpop.xlane.xlu1 %910 }
 0x1be   : > { %v1048_v19 = vmax.f32 %v1046_v3, %v1047_v9  ;;  %v1007_v21 = vadd.f32 %v1006_v15, %v1005_v10  ;;  %v994_v57 = vsel %vm985_vm9, %v924_v12, 0.0  ;;  %v925_v23 = vadd.f32 %v1971_v61, %v911_v18 }
 0x1bf   : > { %v1008_v24 = vsel %vm996_vm10, %v994_v57, 0.0 }
 0x1c0   : > { %v1049_v25 = vrot.slane %v1048_v19, 1  ;;  %v1009_v26 = vadd.f32 %v1008_v24, %v1007_v21  ;;  %v995_v59 = vsel %vm986_vm11, %v925_v23, 0.0 }
 0x1c1   : > { %v1010_v29 = vsel %vm996_vm10, %v995_v59, 0.0 }
 0x1c2   : > { %v1050_v32 = vmax.f32 %v1048_v19, %v1049_v25  ;;  %v1011_v33 = vadd.f32 %v1010_v29, %v1009_v26  ;;  %v1052_v25 = vld [vmem:[#allocation4] sm:$0x1] }
 0x1c4   : > { %v1051_v2 = vmax.f32 %v1029_v28, %v1050_v32  ;;  %v1012_v34 = vrot.slane %v1011_v33, 4 }
 0x1c6   : > { %v1061_v61 = vrot.slane %v1051_v2, %v2068_v31  ;;  %1110 = vst.msk [vmem:[#allocation3] sm:$0x1] %vm1019_vm12, %v1051_v2  ;;  %v1013_v40 = vadd.f32 %v1012_v34, %v1011_v33  ;;  %v1053_v60 = vsub.f32 %v1029_v28, %v1051_v2  ;;  %v1714_v2 = vmov (!%p1381_p0), 0  }
 0x1c7   : > { %1554 = vset.pattern.permute.xlu0 (!%p1381_p0), %v1714_v2  ;;  %1555 = vset.pattern.permute.xlu1 (!%p1381_p0), %v1714_v2 }
 0x1c8   : > { %v1063_v35 = vsub.f32 %v2006_v17, %v1061_v61  ;;  %v1064_v8 = vsub.f32 %v1995_v13, %v1061_v61  ;;  %v1065_v36 = vsub.f32 %v2003_v16, %v1061_v61  ;;  %v1066_v38 = vsub.f32 %v2013_v20, %v1061_v61 }
 0x1c9   : > { %v1067_v46 = vsub.f32 %v1991_v11, %v1061_v61  ;;  %v1068_v43 = vsub.f32 %v1999_v14, %v1061_v61  ;;  %v1069_v45 = vsub.f32 %v2019_v22, %v1061_v61  ;;  %v1014_v27 = vrot.slane %v1013_v40, 2 }
 0x1ca   : > { %v1071_v41 = vmul.f32 1.442695, %v1063_v35  ;;  %v1073_v42 = vmul.f32 1.442695, %v1064_v8  ;;  %v1075_v37 = vmul.f32 1.442695, %v1065_v36  ;;  %v1070_v13 = vsub.f32 %v2030_v30, %v1061_v61 }
 0x1cb   : > { %v1077_v44 = vmul.f32 1.442695, %v1066_v38  ;;  %v1079_v17 = vmul.f32 1.442695, %v1067_v46  ;;  %v1081_v16 = vmul.f32 1.442695, %v1068_v43  ;;  %v1015_v20 = vadd.f32 %v1014_v27, %v1013_v40 }
 0x1cc   : > { %1536 = vpow2.f32 %v1071_v41  ;;  %v1083_v11 = vmul.f32 1.442695, %v1069_v45  ;;  %v1085_v14 = vmul.f32 1.442695, %v1070_v13  ;;  %v1054_v6 = vmul.f32 1.442695, %v1053_v60 }
 0x1cd   : > { %1538 = vpow2.f32 %v1073_v42  ;;  %v1016_v47 = vrot.slane %v1015_v20, 1  ;;  %v1126_v34 = vld [vmem:[#allocation3] sm:$0x1] (!%p1381_p0) }
 0x1ce   : > { %1540 = vpow2.f32 %v1075_v37 }
 0x1cf   : > { %1542 = vpow2.f32 %v1077_v44  ;;  %v1017_v49 = vadd.f32 %v1016_v47, %v1015_v20 }
 0x1d0   : > { %1544 = vpow2.f32 %v1079_v17 }
 0x1d1   : > { %1546 = vpow2.f32 %v1081_v16  ;;  %v1018_v50 = vadd.f32 %v1017_v49, %v987_v48 }
 0x1d2   : > { %1548 = vpow2.f32 %v1083_v11 }
 0x1d3   : > { %1550 = vpow2.f32 %v1085_v14  ;;  %1020 = vst.msk [vmem:[#allocation2] sm:$0x1] %vm1019_vm12, %v1018_v50 }
 0x1d4   : > { %1552 = vpow2.f32 %v1054_v6 }
 0x1d6   : > { %v1537_v51 = vpop.eup %1536 }
 0x1d7   : > { %v1539_v22 = vpop.eup %1538  ;;  %v1087_v52 = vsel %vm996_vm10, %v1537_v51, 0.0 }
 0x1d8   : > { %v1541_v30 = vpop.eup %1540  ;;  %v1088_v53 = vsel %vm996_vm10, %v1539_v22, 0.0 }
 0x1d9   : > { %v1543_v54 = vpop.eup %1542  ;;  %v1089_v55 = vadd.f32 %v1088_v53, %v1087_v52  ;;  %v1090_v39 = vsel %vm996_vm10, %v1541_v30, 0.0 }
 0x1da   : > { %v1545_v58 = vpop.eup %1544  ;;  %v1092_v63 = vsel %vm996_vm10, %v1543_v54, 0.0  ;;  %v1115_v32 = vld [vmem:[#allocation2] sm:$0x1] (!%p1381_p0) }
 0x1db   : > { %v1091_v56 = vadd.f32 %v1090_v39, %v1089_v55  ;;  %v1547_v1 = vpop.eup %1546  ;;  %v1094_v4 = vsel %vm996_vm10, %v1545_v58, 0.0  ;;  %1118 = vperm.xlu0 (!%p1381_p0), %1554, %v1115_v32  }
 0x1dc   : > { %v1549_v62 = vpop.eup %1548  ;;  %v1096_v7 = vsel %vm996_vm10, %v1547_v1, 0.0 }
 0x1dd   : > { %v1093_v3 = vadd.f32 %v1092_v63, %v1091_v56  ;;  %v1551_v9 = vpop.eup %1550  ;;  %v1098_v0 = vsel %vm996_vm10, %v1549_v62, 0.0 }
 0x1de   : > { %v1100_v15 = vsel %vm996_vm10, %v1551_v9, 0.0  ;;  %v1553_v24 = vpop.eup %1552 }
 0x1df   : > { %v1095_v5 = vadd.f32 %v1094_v4, %v1093_v3  ;;  %v1056_v28 = vmul.f32 %v1553_v24, %v1052_v25  ;;  %1129 = vperm.xlu0 (!%p1381_p0), %1554, %v1126_v34  }
 0x1e1   : > { %v1097_v10 = vadd.f32 %v1096_v7, %v1095_v5 }
 0x1e3   : > { %v1099_v12 = vadd.f32 %v1098_v0, %v1097_v10 }
 0x1e5   : > { %v1101_v18 = vadd.f32 %v1100_v15, %v1099_v12 }
 0x1e7   : > { %v1102_v19 = vrot.slane %v1101_v18, 4 }
 0x1e9   : > { %v1103_v21 = vadd.f32 %v1102_v19, %v1101_v18 }
 0x1eb   : > { %v1104_v57 = vrot.slane %v1103_v21, 2 }
 0x1ed   : > { %v1105_v23 = vadd.f32 %v1104_v57, %v1103_v21 }
 0x1ef   : > { %v1106_v26 = vrot.slane %v1105_v23, 1  ;;  %1114 = sbr.rel (%p1381_p0) target bundleno = 640 (0x280), region = 60 }
 0x1f1   : > { %v1107_v59 = vadd.f32 %v1106_v26, %v1105_v23 }
 0x1f3   : > { %v1108_v29 = vadd.f32 %v1107_v59, %v1056_v28 }
 0x1f5   : > { %1109 = vst.msk [vmem:[#allocation4] sm:$0x1] %vm1019_vm12, %v1108_v29 }
 0x1fc   : > { %v1137_v33 = vld [vmem:[#allocation4] sm:$0x1] }
 0x1fd   : > { %1140 = vperm.xlu1 %1555, %v1137_v33  }
 0x25a   : > { %v1119_v61 = vpop.permute.xlu0 %1118 }
 0x25b   : > { %v1124_v8 = vrot.slane %v1119_v61, %v2068_v31 }
 0x25d   : > { %1125 = vst [vmem:[%s432_s17] sm:$0x1] %v1124_v8 }
 0x25e   : > { %v1130_v38 = vpop.permute.xlu0 %1129 }
 0x25f   : > { %v1135_v46 = vrot.slane %v1130_v38, %v2068_v31 }
 0x261   : > { %1136 = vst [vmem:[%s438_s16] sm:$0x1] %v1135_v46 }
 0x27c   : > { %v1141_v35 = vpop.permute.xlu1 %1140 }
 0x27d   : > { %v1146_v36 = vrot.slane %v1141_v35, %v2068_v31 }
 0x27f   : > { %1147 = vst [vmem:[%s444_s27] sm:$0x1] %v1146_v36 }
 0x280 PF: > { %s2262_s18 = sadd.s32 4294967295, %s1710_s7   ;;  %s2105_s24 = sshll.u32 %s1698_s19, 4 }
 0x281   : > { %s2102_s13 = sand.u32 1, %s2262_s18   ;;  %s2111_s23 = scalar_lea.hbm %s2242_s9, %s2105_s24 }
 0x282   : > { %s1182_s30 = sshll.u32 %s438_s16, 4  ;;  %s2121_s28 = scalar_lea.hbm %s2241_s8, %s2105_s24  ;;  %s2115_s30 = int_to_ptr.vmem [resolvable:$true] %s1182_s30 }
 0x283   : > { %s1153_s19 = scalar_lea.sflag [#allocation9], %s2102_s13  ;;  %s1556_s21 = scalar_lea.vmem %s2115_s30, 16 }
 0x284   : > { %p1557_p1 = scmp.ne.s32.totalorder %s2115_s30, %s1556_s21  ;;  %s1715_s29 = smov [#allocation8]  }
 0x285   : > { %s1560_s12 = sshll.u32 %s1715_s29, 4  ;;  %s1561_s12 = int_to_ptr.vmem [resolvable:$false] %s1560_s12 }
 0x286   : > { %p1558_p2 = pnand %p1557_p1, %p1827_p3  ;;  %s1562_s16 = scalar_lea.vmem %s1561_s12, 32 }
 0x287   : > { %p1563_p5 = scmp.lt.s32.totalorder %s2115_s30, %s1561_s12  ;;  %p1564_p6 = scmp.lt.s32.totalorder %s1562_s16, %s1556_s21 }
 0x288   : > { %p1559_p4 = pneg %p1558_p2 }
 0x289   : > { %p1565_p7 = por %p1564_p6, %p1563_p5 }
 0x28b   : > { %p1566_p8 = pnand %p1565_p7, %p1559_p4 }
 0x28d   : > { %1569 = shalt.err (!%p1566_p8)
}
 0x28e   : > { %s1570_s18 = scalar_lea.hbm %s2111_s23, 16  ;;  %s1574_s14 = scalar_lea.hbm %s2242_s9, 32 }
 0x28f   : > { %p1571_p10 = scmp.ne.s32.totalorder %s2111_s23, %s1570_s18  ;;  %p1575_p13 = scmp.lt.u32.totalorder %s2111_s23, %s2242_s9 }
 0x290   : > { %p1576_p0 = scmp.lt.u32.totalorder %s1574_s14, %s1570_s18  ;;  %p1578_p2 = scmp.lt.u32.totalorder %s1570_s18, %s2111_s23 }
 0x291   : > { %p1572_p11 = pnand %p1571_p10, %p1827_p3 }
 0x292   : > { %p1577_p1 = por %p1576_p0, %p1575_p13 }
 0x293   : > { %p1573_p12 = pneg %p1572_p11 }
 0x294   : > { %p1579_p4 = por %p1578_p2, %p1577_p1 }
 0x296   : > { %p1580_p5 = pnand %p1579_p4, %p1573_p12 }
 0x298   : > { %1583 = shalt.err (!%p1580_p5)
}
 0x299   : > { %1438 = dma.vmem_to_hbm [thread:$0]  (%p1827_p3), %s2115_s30, 16, %s2111_s23, %s1153_s19  }
 0x29a   : > { %s1169_s21 = sshll.u32 %s432_s17, 4  ;;  %s2153_s18 = scalar_lea.hbm %s2243_s10, %s2105_s24  ;;  %s2155_s21 = int_to_ptr.vmem [resolvable:$true] %s1169_s21 }
 0x29b   : > { %s2159_s25 = sshll.u32 %s444_s27, 4  ;;  %s1149_s20 = scalar_lea.sflag [#allocation7], %s1850_s11  ;;  %s1196_s25 = int_to_ptr.vmem [resolvable:$true] %s2159_s25 }
 0x29c   : > { %s1584_s14 = scalar_lea.vmem %s2155_s21, 16  ;;  %s1716_s17 = smov [#allocation6]  }
 0x29d   : > { %p1585_p6 = scmp.ne.s32.totalorder %s2155_s21, %s1584_s14  ;;  %s1588_s23 = sshll.u32 %s1716_s17, 4  ;;  %s1589_s23 = int_to_ptr.vmem [resolvable:$false] %s1588_s23 }
 0x29e   : > { %s1590_s30 = scalar_lea.vmem %s1589_s23, 32  ;;  %p1591_p10 = scmp.lt.s32.totalorder %s2155_s21, %s1589_s23 }
 0x29f   : > { %p1586_p7 = pnand %p1585_p6, %p1827_p3  ;;  %p1592_p11 = scmp.lt.s32.totalorder %s1590_s30, %s1584_s14 }
 0x2a1   : > { %p1587_p8 = pneg %p1586_p7  ;;  %p1593_p12 = por %p1592_p11, %p1591_p10 }
 0x2a3   : > { %p1594_p13 = pnand %p1593_p12, %p1587_p8 }
 0x2a5   : > { %1597 = shalt.err (!%p1594_p13)
}
 0x2a6   : > { %s1598_s27 = scalar_lea.hbm %s2121_s28, 16  ;;  %s1602_s22 = scalar_lea.hbm %s2241_s8, 32 }
 0x2a7   : > { %p1599_p0 = scmp.ne.s32.totalorder %s2121_s28, %s1598_s27  ;;  %p1603_p4 = scmp.lt.u32.totalorder %s2121_s28, %s2241_s8 }
 0x2a8   : > { %p1604_p5 = scmp.lt.u32.totalorder %s1602_s22, %s1598_s27  ;;  %p1606_p7 = scmp.lt.u32.totalorder %s1598_s27, %s2121_s28 }
 0x2a9   : > { %p1600_p1 = pnand %p1599_p0, %p1827_p3 }
 0x2aa   : > { %p1605_p6 = por %p1604_p5, %p1603_p4 }
 0x2ab   : > { %p1601_p2 = pneg %p1600_p1 }
 0x2ac   : > { %p1607_p8 = por %p1606_p7, %p1605_p6 }
 0x2ae   : > { %p1608_p10 = pnand %p1607_p8, %p1601_p2 }
 0x2b0   : > { %1611 = shalt.err (!%p1608_p10)
}
 0x2b1   : > { %1437 = dma.vmem_to_hbm [thread:$0]  (%p1827_p3), %s2155_s21, 16, %s2121_s28, %s1149_s20  }
 0x2b2   : > { %s1612_s16 = scalar_lea.vmem %s1196_s25, 16  ;;  %s1717_s14 = smov [#allocation10]  }
 0x2b3   : > { %p1613_p11 = scmp.ne.s32.totalorder %s1196_s25, %s1612_s16  ;;  %s1616_s17 = sshll.u32 %s1717_s14, 4  ;;  %s1617_s17 = int_to_ptr.vmem [resolvable:$false] %s1616_s17 }
 0x2b4   : > { %s1618_s23 = scalar_lea.vmem %s1617_s17, 32  ;;  %p1619_p0 = scmp.lt.s32.totalorder %s1196_s25, %s1617_s17 }
 0x2b5   : > { %p1614_p12 = pnand %p1613_p11, %p1827_p3  ;;  %p1620_p1 = scmp.lt.s32.totalorder %s1618_s23, %s1612_s16 }
 0x2b7   : > { %p1615_p13 = pneg %p1614_p12  ;;  %p1621_p2 = por %p1620_p1, %p1619_p0 }
 0x2b9   : > { %p1622_p4 = pnand %p1621_p2, %p1615_p13 }
 0x2bb   : > { %1625 = shalt.err (!%p1622_p4)
}
 0x2bc   : > { %s1626_s28 = scalar_lea.hbm %s2153_s18, 16  ;;  %s1630_s30 = scalar_lea.hbm %s2243_s10, 32 }
 0x2bd   : > { %p1627_p5 = scmp.ne.s32.totalorder %s2153_s18, %s1626_s28  ;;  %p1631_p8 = scmp.lt.u32.totalorder %s2153_s18, %s2243_s10 }
 0x2be   : > { %p1632_p10 = scmp.lt.u32.totalorder %s1630_s30, %s1626_s28  ;;  %p1634_p12 = scmp.lt.u32.totalorder %s1626_s28, %s2153_s18 }
 0x2bf   : > { %p1628_p6 = pnand %p1627_p5, %p1827_p3 }
 0x2c0   : > { %p1633_p11 = por %p1632_p10, %p1631_p8 }
 0x2c1   : > { %p1629_p7 = pneg %p1628_p6 }
 0x2c2   : > { %p1635_p13 = por %p1634_p12, %p1633_p11 }
 0x2c4   : > { %p1636_p0 = pnand %p1635_p13, %p1629_p7 }
 0x2c6   : > { %1639 = shalt.err (!%p1636_p0)
}
 0x2c7   : > { %1439 = dma.vmem_to_hbm [thread:$0]  (%p1827_p3), %s1196_s25, 16, %s2153_s18, %s1153_s19  }
 0x2c8 PF: > { %p1453_p1 = scmp.ge.s32.totalorder %s1710_s7, 2  ;;  %s1207_s22 = sand.u32 1, %s1682_s15  }
 0x2c9   : > { %s1208_s29 = scalar_lea.sflag [#allocation7], %s1207_s22 }
 0x2ca   : > { %p1444_p2 = pnand %p1453_p1, %p1839_p9 }
 0x2cc   : > { %1673 = dma.done.wait (!%p1444_p2), %s1208_s29, 16  }
 0x2cd   : > { %1675 = vsyncadd (!%p1444_p2), %s1208_s29, 4294967280  ;;  %s2264_s12 = sadd.s32 4294967294, %s1710_s7  }
 0x2ce   : > { %s1215_s16 = sand.u32 1, %s2264_s12  }
 0x2cf   : > { %s1216_s14 = scalar_lea.sflag [#allocation9], %s1215_s16 }
 0x2d0   : > { %1677 = dma.done.wait (!%p1444_p2), %s1216_s14, 32  }
 0x2d1   : > { %1679 = vsyncadd (!%p1444_p2), %s1216_s14, 4294967264  ;;  %s29_s7 = sadd.s32 1, %s1710_s7   ;;  %s2265_s15 = sld [smem:[#allocation13_spill]] }
 0x2d2   : > { %p26_p3 = scmp.ge.s32.totalorder %s29_s7, 8   ;;  %s2266_s16 = sld [smem:[#allocation14_spill]] }
 0x2d3   : > { %s2267_s17 = sld [smem:[#allocation20_spill]]  ;;  %s2268_s18 = sld [smem:[#allocation15_spill]] }
 0x2d4   : > { %s2269_s19 = sld [smem:[#allocation16_spill]]  ;;  %s2270_s20 = sld [smem:[#allocation17_spill]] }
 0x2d5   : > { %s2271_s21 = sld [smem:[#allocation18_spill]]  ;;  %28 = sbr.rel (!%p26_p3) target bundleno = 10 (0xa), region = 133 }
 0x2dc   :  { %1228 = vsyncpa [#allocation7], 1 }
 0x2dd   :  { %1230 = vsyncpa [#allocation7 + $0x1], 1 }
 0x2de   :  { %1231 = vsyncpa [#allocation9], 1 }
 0x2df   :  { %1233 = vsyncpa [#allocation9 + $0x1], 1 }

</bundles_post_ra>
